<compile_context>
chip_gen: v7x
topology: tpu7x:2x2x1
jax: 0.10.0
libtpu: 0.0.40
codegen_flags: <defaults>
</compile_context>

<pallas_src>
import functools

import jax
import jax.numpy as jnp
from jax.experimental import pallas as pl
from jax.experimental.pallas import tpu as pltpu


def _round_up(x, m):
    return ((x + m - 1) // m) * m


def mlp_kernel(x_ref, w1_ref, b1_ref, w2_ref, b2_ref, wl_ref, bl_ref, out_ref,
               *, batch_tile, seq_len):
    """One grid step: (TB*S, E) bf16 slab -> (TB, C_pad) f32 logits block."""
    x = x_ref[...]                                                     # (TB*S, E) bf16

    # first = nn.Linear(E, H0): bf16 MXU matmul, f32 accumulate.  Bias + ReLU +
    # bf16 downcast fused in one expression so the f32 copy of the largest
    # intermediate is never live past this statement (halves vreg/VMEM pressure,
    # matters most on v5e's single store slot).
    h0 = jnp.maximum(
        jnp.dot(x, w1_ref[...], preferred_element_type=jnp.float32) + b1_ref[...],
        0.0,
    ).astype(jnp.bfloat16)                                             # (TB*S, H0p) bf16

    # mlp_layer[0]: Dropout is identity at inference; Linear(H0, H1), f32 acc.
    h1 = jnp.dot(h0, w2_ref[...],
                 preferred_element_type=jnp.float32) + b2_ref[...]     # (TB*S, H1p) f32

    # permute(0,2,1) + max_pool1d(kernel=S) + squeeze(2) == max over the
    # sequence axis.  The reshape splits the sublane axis (free when S % 8 == 0
    # for f32) and the reduce runs along the cheap sublane direction.
    h1p = h1.shape[-1]
    pooled = jnp.max(h1.reshape(batch_tile, seq_len, h1p), axis=1)     # (TB, H1p) f32

    # last = nn.Linear(H1, C): tiny bf16 matmul against lane-padded weights so
    # the output store is a full-lane (TB, 128k) slab.
    logits = jnp.dot(pooled.astype(jnp.bfloat16), wl_ref[...],
                     preferred_element_type=jnp.float32) + bl_ref[...]  # (TB, Cp) f32

    out_ref[...] = logits.astype(out_ref.dtype)


def _pick_batch_tile(B, S, target_rows=1024):
    """Largest multiple-of-8 divisor of B giving >=2 grid steps and ~<=1024-row slabs."""
    cands = [tb for tb in range(8, B // 2 + 1, 8) if B % tb == 0]
    if not cands:
        return B                       # tiny / odd batch: single grid step
    fitting = [tb for tb in cands if tb * S <= target_rows]
    return max(fitting) if fitting else min(cands)


def _vmem_limit_bytes(TB, S, E, H0p, H1p, Cp):
    """Rough scoped-VMEM budget: double-buffered I/O blocks + weights + live slabs."""
    act_in = 2 * TB * S * E * 2                     # double-buffered bf16 input slab
    out_buf = 2 * TB * Cp * 4                       # double-buffered f32 output block
    weights = 2 * (E * H0p * 2 + H0p * H1p * 2 + H1p * Cp * 2
                   + (H0p + H1p + Cp) * 4)          # (double-buffered) padded weights+biases
    live = TB * S * (H0p * 2 + H1p * 4)             # bf16 h0 + f32 h1 intermediates
    est = act_in + out_buf + weights + live
    # Generous 2x margin, floored at 16 MiB (safe on v5e/v6e/v7x), capped well
    # below v7x's 64 MiB physical VMEM.
    return int(min(max(2 * est + (1 << 20), 16 << 20), 48 << 20))


def mlp_forward(tokens, emb_table, w1, b1, w2, b2, wl, bl, *, batch_tile=None):
    B, S = tokens.shape
    E = emb_table.shape[1]
    H0 = w1.shape[1]
    H1 = w2.shape[1]
    C = wl.shape[1]

    TB = _pick_batch_tile(B, S) if batch_tile is None else batch_tile
    assert B % TB == 0, "batch_tile must divide batch"
    assert TB == B or TB % 8 == 0, \
        "batch_tile must be a multiple of 8 (or the full batch) for unmasked stores"

    # Embedding lookup (nn.Embedding) as an XLA gather straight from a bf16
    # table: halves HBM bytes on the dominant input stream and removes the
    # extra f32 slab write+read of the previous version.
    # TODO(synk): a fully fused in-kernel gather (scalar-prefetched token ids +
    # pl.Element row-gather / manual DMA) is not implemented at these shapes.
    emb_bf16 = emb_table.astype(jnp.bfloat16)
    x = jnp.take(emb_bf16, tokens.astype(jnp.int32).reshape(-1), axis=0)   # (B*S, E) bf16

    # Zero-pad every output-feature (lane) dim to 128 so all intermediates,
    # MXU pushes and stores inside the kernel are lane-dense.  E (contraction
    # dim of matmul 1) is intentionally NOT padded.
    H0p = _round_up(H0, 128)
    H1p = _round_up(H1, 128)
    Cp = _round_up(C, 128)

    w1_p = jnp.zeros((E, H0p), jnp.bfloat16).at[:, :H0].set(w1.astype(jnp.bfloat16))
    b1_p = jnp.zeros((1, H0p), jnp.float32).at[:, :H0].set(b1)
    w2_p = jnp.zeros((H0p, H1p), jnp.bfloat16).at[:H0, :H1].set(w2.astype(jnp.bfloat16))
    b2_p = jnp.zeros((1, H1p), jnp.float32).at[:, :H1].set(b2)
    wl_p = jnp.zeros((H1p, Cp), jnp.bfloat16).at[:H1, :C].set(wl.astype(jnp.bfloat16))
    bl_p = jnp.zeros((1, Cp), jnp.float32).at[:, :C].set(bl)

    grid = (B // TB,)
    kernel = functools.partial(mlp_kernel, batch_tile=TB, seq_len=S)

    out_padded = pl.pallas_call(
        kernel,
        out_shape=jax.ShapeDtypeStruct((B, Cp), jnp.float32),
        grid_spec=pltpu.PrefetchScalarGridSpec(
            num_scalar_prefetch=0,
            grid=grid,
            in_specs=[
                pl.BlockSpec((TB * S, E), lambda i: (i, 0)),    # activation slab (bf16)
                # Constant-index weight/bias blocks.  (Left at the default
                # buffering: they are small once padded; single-buffering via
                # pipeline_mode is an optional further VMEM saving.)
                pl.BlockSpec((E, H0p), lambda i: (0, 0)),       # W_first (bf16, lane-padded)
                pl.BlockSpec((1, H0p), lambda i: (0, 0)),       # b_first (f32)
                pl.BlockSpec((H0p, H1p), lambda i: (0, 0)),     # W_hidden (bf16)
                pl.BlockSpec((1, H1p), lambda i: (0, 0)),       # b_hidden (f32)
                pl.BlockSpec((H1p, Cp), lambda i: (0, 0)),      # W_last (bf16)
                pl.BlockSpec((1, Cp), lambda i: (0, 0)),        # b_last (f32)
            ],
            # Per-step output block (no residency across the grid axis) ->
            # the row-tile axis is legally "parallel" (v7x megacore friendly).
            out_specs=pl.BlockSpec((TB, Cp), lambda i: (i, 0)),
        ),
        compiler_params=pltpu.CompilerParams(
            dimension_semantics=("parallel",),
            vmem_limit_bytes=_vmem_limit_bytes(TB, S, E, H0p, H1p, Cp),
        ),
    )(x, w1_p, b1_p, w2_p, b2_p, wl_p, bl_p)

    return out_padded[:, :C]


def reference_forward(tokens, emb_table, w1, b1, w2, b2, wl, bl):
    emb = jnp.take(emb_table, tokens.astype(jnp.int32), axis=0)
    h = emb @ w1 + b1
    h = jnp.maximum(h, 0.0)          # dropout = identity at inference
    h = h @ w2 + b2
    pooled = jnp.max(h, axis=1)      # max over sequence
    return pooled @ wl + bl


if __name__ == "__main__":
    # Small shapes consistent with the module's forward.
    VOCAB, E = 50, 32          # vocab_size, embedding_dim
    HIDDEN = (64, 32)          # hidden_dims  -> one mlp_layer Linear(64, 32)
    C = 4                      # n_class
    B, S = 2, 8                # batch, sequence length

    key = jax.random.PRNGKey(0)
    ks = jax.random.split(key, 8)

    # Deterministic synthetic params (PyTorch init: normal(mean=0, std=0.01)).
    emb_table = 0.01 * jax.random.normal(ks[0], (VOCAB, E), jnp.float32)   # pretrained_embed stand-in
    w1 = 0.01 * jax.random.normal(ks[1], (E, HIDDEN[0]), jnp.float32)
    b1 = 0.01 * jax.random.normal(ks[2], (1, HIDDEN[0]), jnp.float32)
    w2 = 0.01 * jax.random.normal(ks[3], (HIDDEN[0], HIDDEN[1]), jnp.float32)
    b2 = 0.01 * jax.random.normal(ks[4], (1, HIDDEN[1]), jnp.float32)
    wl = 0.01 * jax.random.normal(ks[5], (HIDDEN[1], C), jnp.float32)
    bl = 0.01 * jax.random.normal(ks[6], (1, C), jnp.float32)

    tokens = jax.random.randint(ks[7], (B, S), 0, VOCAB, jnp.int32)

    # TODO(synk): nn.Dropout is identity in inference mode; no stochastic masking applied.
    out = jax.block_until_ready(mlp_forward(tokens, emb_table, w1, b1, w2, b2, wl, bl))
    ref = reference_forward(tokens, emb_table, w1, b1, w2, b2, wl, bl)
    assert out.shape == (B, C)
    # Kernel runs the matmuls in bf16 (f32 accumulate) on a bf16-gathered
    # embedding; compare to the f32 reference with bf16-rounding tolerance.
    assert jnp.allclose(out, ref, atol=2e-4, rtol=2e-2), (out, ref)

    # Larger batch: exercises the multi-step grid path (TB multiple of 8,
    # >= 2 pipelined steps, parallel row-tile axis for v7x megacore).
    B2 = 64
    tokens2 = jax.random.randint(jax.random.PRNGKey(1), (B2, S), 0, VOCAB, jnp.int32)
    out2 = jax.block_until_ready(mlp_forward(tokens2, emb_table, w1, b1, w2, b2, wl, bl))
    ref2 = reference_forward(tokens2, emb_table, w1, b1, w2, b2, wl, bl)
    assert out2.shape == (B2, C)
    assert jnp.allclose(out2, ref2, atol=2e-4, rtol=2e-2), (out2, ref2)

    print("KERNEL_OK")
</pallas_src>

<mosaic_0001>
module attributes {stable_mosaic.version = 11 : i64} {
  func.func @mlp_kernel(%arg0: i32, %arg1: memref<16x32xbf16, #tpu.memory_space<vmem>>, %arg2: memref<32x128xbf16, #tpu.memory_space<vmem>>, %arg3: memref<1x128xf32, #tpu.memory_space<vmem>>, %arg4: memref<128x128xbf16, #tpu.memory_space<vmem>>, %arg5: memref<1x128xf32, #tpu.memory_space<vmem>>, %arg6: memref<128x128xbf16, #tpu.memory_space<vmem>>, %arg7: memref<1x128xf32, #tpu.memory_space<vmem>>, %arg8: memref<2x128xf32, #tpu.memory_space<vmem>>) attributes {dimension_semantics = [#tpu.dimension_semantics<parallel>], iteration_bounds = array<i64: 1>, scalar_prefetch = 0 : i64, scratch_operands = 0 : i64, tpu.core_type = #tpu.core_type<tc>, window_params = [{transform_indices = @transform_0, window_bounds = array<i64: 16, 32>}, {pipeline_mode = #tpu.pipeline_mode<synchronous>, transform_indices = @transform_1, window_bounds = array<i64: 32, 128>}, {pipeline_mode = #tpu.pipeline_mode<synchronous>, transform_indices = @transform_2, window_bounds = array<i64: 1, 128>}, {pipeline_mode = #tpu.pipeline_mode<synchronous>, transform_indices = @transform_3, window_bounds = array<i64: 128, 128>}, {pipeline_mode = #tpu.pipeline_mode<synchronous>, transform_indices = @transform_4, window_bounds = array<i64: 1, 128>}, {pipeline_mode = #tpu.pipeline_mode<synchronous>, transform_indices = @transform_5, window_bounds = array<i64: 128, 128>}, {pipeline_mode = #tpu.pipeline_mode<synchronous>, transform_indices = @transform_6, window_bounds = array<i64: 1, 128>}, {transform_indices = @transform_7, window_bounds = array<i64: 2, 128>}]} {
    %c0 = arith.constant 0 : index
    %c0_0 = arith.constant 0 : index
    %0 = vector.load %arg1[%c0, %c0_0] : memref<16x32xbf16, #tpu.memory_space<vmem>>, vector<16x32xbf16>
    %c0_1 = arith.constant 0 : index
    %c0_2 = arith.constant 0 : index
    %1 = vector.load %arg2[%c0_1, %c0_2] : memref<32x128xbf16, #tpu.memory_space<vmem>>, vector<32x128xbf16>
    %cst = arith.constant dense<0.000000e+00> : vector<16x128xf32>
    %2 = tpu.matmul %0, %1, %cst {dimension_numbers = #tpu.dot_dimension_numbers<[1], [0], [0], [1], [0, 0, 1, 1], [], []>} : vector<16x32xbf16>, vector<32x128xbf16>, vector<16x128xf32> -> vector<16x128xf32>
    %c0_3 = arith.constant 0 : index
    %c0_4 = arith.constant 0 : index
    %3 = vector.load %arg3[%c0_3, %c0_4] : memref<1x128xf32, #tpu.memory_space<vmem>>, vector<1x128xf32>
    %4 = vector.broadcast %3 : vector<1x128xf32> to vector<16x128xf32>
    %5 = arith.addf %2, %4 : vector<16x128xf32>
    %cst_5 = arith.constant 0.000000e+00 : f32
    %6 = vector.broadcast %cst_5 : f32 to vector<16x128xf32>
    %7 = arith.maximumf %5, %6 : vector<16x128xf32>
    %8 = arith.truncf %7 : vector<16x128xf32> to vector<16x128xbf16>
    %c0_6 = arith.constant 0 : index
    %c0_7 = arith.constant 0 : index
    %9 = vector.load %arg4[%c0_6, %c0_7] : memref<128x128xbf16, #tpu.memory_space<vmem>>, vector<128x128xbf16>
    %cst_8 = arith.constant dense<0.000000e+00> : vector<16x128xf32>
    %10 = tpu.matmul %8, %9, %cst_8 {dimension_numbers = #tpu.dot_dimension_numbers<[1], [0], [0], [1], [0, 0, 1, 1], [], []>} : vector<16x128xbf16>, vector<128x128xbf16>, vector<16x128xf32> -> vector<16x128xf32>
    %c0_9 = arith.constant 0 : index
    %c0_10 = arith.constant 0 : index
    %11 = vector.load %arg5[%c0_9, %c0_10] : memref<1x128xf32, #tpu.memory_space<vmem>>, vector<1x128xf32>
    %12 = vector.broadcast %11 : vector<1x128xf32> to vector<16x128xf32>
    %13 = arith.addf %10, %12 : vector<16x128xf32>
    %14 = vector.shape_cast %13 : vector<16x128xf32> to vector<2x8x128xf32>
    %cst_11 = arith.constant dense<0xFF800000> : vector<2x128xf32>
    %15 = vector.multi_reduction <maximumf>, %14, %cst_11 [1] : vector<2x8x128xf32> to vector<2x128xf32>
    %16 = arith.truncf %15 : vector<2x128xf32> to vector<2x128xbf16>
    %c0_12 = arith.constant 0 : index
    %c0_13 = arith.constant 0 : index
    %17 = vector.load %arg6[%c0_12, %c0_13] : memref<128x128xbf16, #tpu.memory_space<vmem>>, vector<128x128xbf16>
    %cst_14 = arith.constant dense<0.000000e+00> : vector<2x128xf32>
    %18 = tpu.matmul %16, %17, %cst_14 {dimension_numbers = #tpu.dot_dimension_numbers<[1], [0], [0], [1], [0, 0, 1, 1], [], []>} : vector<2x128xbf16>, vector<128x128xbf16>, vector<2x128xf32> -> vector<2x128xf32>
    %c0_15 = arith.constant 0 : index
    %c0_16 = arith.constant 0 : index
    %19 = vector.load %arg7[%c0_15, %c0_16] : memref<1x128xf32, #tpu.memory_space<vmem>>, vector<1x128xf32>
    %20 = vector.broadcast %19 : vector<1x128xf32> to vector<2x128xf32>
    %21 = arith.addf %18, %20 : vector<2x128xf32>
    %c0_17 = arith.constant 0 : index
    %c0_18 = arith.constant 0 : index
    %22 = vector.load %arg8[%c0_17, %c0_18] : memref<2x128xf32, #tpu.memory_space<vmem>>, vector<2x128xf32>
    tpu.vector_store %arg8[%c0_17, %c0_18], %21 {strides = array<i32>} : memref<2x128xf32, #tpu.memory_space<vmem>>, vector<2x128xf32>,
    return
  }
  func.func @transform_0(%arg0: i32) -> (i32, i32) {
    %c0_i32 = arith.constant 0 : i32
    %c0_i32_0 = arith.constant 0 : i32
    return %arg0, %c0_i32 : i32, i32
  }
  func.func @transform_1(%arg0: i32) -> (i32, i32) {
    %c0_i32 = arith.constant 0 : i32
    %c0_i32_0 = arith.constant 0 : i32
    %c0_i32_1 = arith.constant 0 : i32
    return %c0_i32, %c0_i32_0 : i32, i32
  }
  func.func @transform_2(%arg0: i32) -> (i32, i32) {
    %c0_i32 = arith.constant 0 : i32
    %c0_i32_0 = arith.constant 0 : i32
    %c0_i32_1 = arith.constant 0 : i32
    return %c0_i32, %c0_i32_0 : i32, i32
  }
  func.func @transform_3(%arg0: i32) -> (i32, i32) {
    %c0_i32 = arith.constant 0 : i32
    %c0_i32_0 = arith.constant 0 : i32
    %c0_i32_1 = arith.constant 0 : i32
    return %c0_i32, %c0_i32_0 : i32, i32
  }
  func.func @transform_4(%arg0: i32) -> (i32, i32) {
    %c0_i32 = arith.constant 0 : i32
    %c0_i32_0 = arith.constant 0 : i32
    %c0_i32_1 = arith.constant 0 : i32
    return %c0_i32, %c0_i32_0 : i32, i32
  }
  func.func @transform_5(%arg0: i32) -> (i32, i32) {
    %c0_i32 = arith.constant 0 : i32
    %c0_i32_0 = arith.constant 0 : i32
    %c0_i32_1 = arith.constant 0 : i32
    return %c0_i32, %c0_i32_0 : i32, i32
  }
  func.func @transform_6(%arg0: i32) -> (i32, i32) {
    %c0_i32 = arith.constant 0 : i32
    %c0_i32_0 = arith.constant 0 : i32
    %c0_i32_1 = arith.constant 0 : i32
    return %c0_i32, %c0_i32_0 : i32, i32
  }
  func.func @transform_7(%arg0: i32) -> (i32, i32) {
    %c0_i32 = arith.constant 0 : i32
    %c0_i32_0 = arith.constant 0 : i32
    return %arg0, %c0_i32 : i32, i32
  }
}

</mosaic_0001>

<bundles_post_ra>
// kernel: tpu_custom_call.1
= control target key start
LH: loop header
LB: loop body
LE: loop exit
PB: predicated region body
PF: predicated region fallthrough
CT: control target
= control target key end

     0   :  { %12 = vsyncpa [#allocation3], 0  ;;  %s830_s0 = inlined_call_operand.hbm [shape: bf16[16,32], index: 0, kind: input, shape index: {}]   ;;  %s831_s1 = inlined_call_operand.hbm [shape: bf16[32,128], index: 1, kind: input, shape index: {}]   ;;  %s832_s2 = inlined_call_operand.vmem [shape: f32[1,128], index: 2, kind: input, shape index: {}]   ;;  %s833_s3 = inlined_call_operand.hbm [shape: bf16[128,128], index: 3, kind: input, shape index: {}]   ;;  %s834_s4 = inlined_call_operand.vmem [shape: f32[1,128], index: 4, kind: input, shape index: {}]   ;;  %s835_s5 = inlined_call_operand.hbm [shape: bf16[128,128], index: 5, kind: input, shape index: {}]   ;;  %s836_s6 = inlined_call_operand.vmem [shape: f32[1,128], index: 6, kind: input, shape index: {}]   ;;  %s837_s7 = inlined_call_operand.hbm [shape: f32[2,128], index: 7, kind: output, shape index: {}]  }
   0x1   :  { %13 = vsyncpa [#allocation6], 0 }
   0x2   :  { %14 = vsyncpa [#allocation9], 0 }
   0x3   :  { %15 = vsyncpa [#allocation4], 0  ;;  %s662_s24 = smov [#allocation5]   ;;  %s663_s26 = smov [#allocation2]  }
   0x4   :  { %s33_s25 = sshll.u32 %s662_s24, 4  ;;  %s21_s27 = sshll.u32 %s663_s26, 4  ;;  %s34_s25 = int_to_ptr.vmem [resolvable:$true] %s33_s25  ;;  %s711_s27 = int_to_ptr.vmem [resolvable:$true] %s21_s27 }
   0x5   :  { %s544_s30 = scalar_lea.hbm %s831_s1, 256 }
   0x6   :  { %p545_p0 = scmp.ne.s32.totalorder %s831_s1, %s544_s30  ;;  %p548_p1 = scmp.lt.u32.totalorder %s544_s30, %s831_s1 }
   0x8   :  { %p550_p2 = pnand %p548_p1, %p545_p0 }
   0xa   :  { %553 = shalt.err (!%p550_p2)
}
   0xb   :  { %s554_s12 = scalar_lea.vmem %s34_s25, 256  ;;  %p559_p4 = scmp.lt.s32.totalorder %s34_s25, %s34_s25 }
   0xc   :  { %p555_p3 = scmp.ne.s32.totalorder %s34_s25, %s554_s12  ;;  %p560_p5 = scmp.lt.s32.totalorder %s554_s12, %s554_s12 }
   0xe   :  { %p561_p6 = por %p560_p5, %p559_p4 }
  0x10   :  { %p562_p7 = pnand %p561_p6, %p555_p3 }
  0x12   :  { %565 = shalt.err (!%p562_p7)
}
  0x13   :  { %s664_s13 = smov 64   ;;  %s665_s14 = smov 4  }
  0x14   :  { %39 = dma.hbm_to_vmem [thread:$0]  %s831_s1, 256, %s34_s25, [#allocation6], %s664_s13, %s664_s13, %s665_s14  }
  0x15   :  { %s566_s19 = scalar_lea.hbm %s830_s0, 128 }
  0x16   :  { %p567_p8 = scmp.ne.s32.totalorder %s830_s0, %s566_s19  ;;  %p570_p9 = scmp.lt.u32.totalorder %s566_s19, %s830_s0 }
  0x18   :  { %p572_p10 = pnand %p570_p9, %p567_p8 }
  0x1a   :  { %575 = shalt.err (!%p572_p10)
}
  0x1b   :  { %s576_s24 = scalar_lea.vmem %s711_s27, 128  ;;  %p581_p12 = scmp.lt.s32.totalorder %s711_s27, %s711_s27 }
  0x1c   :  { %p577_p11 = scmp.ne.s32.totalorder %s711_s27, %s576_s24  ;;  %p582_p13 = scmp.lt.s32.totalorder %s576_s24, %s576_s24 }
  0x1e   :  { %p583_p0 = por %p582_p13, %p581_p12 }
  0x20   :  { %p584_p1 = pnand %p583_p0, %p577_p11 }
  0x22   :  { %587 = shalt.err (!%p584_p1)
}
  0x23   :  { %27 = dma.hbm_to_vmem [thread:$0]  %s830_s0, 128, %s711_s27, [#allocation3], %s664_s13, %s664_s13, %s665_s14  }
  0x24   :  { %s666_s26 = smov [#allocation7]   ;;  %s667_s29 = smov [#allocation8]  }
  0x25   :  { %s47_s28 = sshll.u32 %s666_s26, 4  ;;  %s61_s30 = sshll.u32 %s667_s29, 4  ;;  %s48_s28 = int_to_ptr.vmem [resolvable:$true] %s47_s28  ;;  %s748_s30 = int_to_ptr.vmem [resolvable:$true] %s61_s30 }
  0x26   :  { %s588_s10 = scalar_lea.hbm %s833_s3, 1024 }
  0x27   :  { %p589_p2 = scmp.ne.s32.totalorder %s833_s3, %s588_s10  ;;  %p592_p3 = scmp.lt.u32.totalorder %s588_s10, %s833_s3 }
  0x29   :  { %p594_p4 = pnand %p592_p3, %p589_p2 }
  0x2b   :  { %597 = shalt.err (!%p594_p4)
}
  0x2c   :  { %s598_s0 = scalar_lea.vmem %s48_s28, 1024  ;;  %p603_p6 = scmp.lt.s32.totalorder %s48_s28, %s48_s28 }
  0x2d   :  { %p599_p5 = scmp.ne.s32.totalorder %s48_s28, %s598_s0  ;;  %p604_p7 = scmp.lt.s32.totalorder %s598_s0, %s598_s0 }
  0x2f   :  { %p605_p8 = por %p604_p7, %p603_p6 }
  0x31   :  { %p606_p9 = pnand %p605_p8, %p599_p5 }
  0x33   :  { %609 = shalt.err (!%p606_p9)
}
  0x34   :  { %53 = dma.hbm_to_vmem [thread:$0]  %s833_s3, 1024, %s48_s28, [#allocation6], %s664_s13, %s664_s13, %s665_s14  }
  0x35   :  { %s610_s20 = scalar_lea.hbm %s835_s5, 1024 }
  0x36   :  { %p611_p10 = scmp.ne.s32.totalorder %s835_s5, %s610_s20  ;;  %p614_p11 = scmp.lt.u32.totalorder %s610_s20, %s835_s5 }
  0x38   :  { %p616_p12 = pnand %p614_p11, %p611_p10 }
  0x3a   :  { %619 = shalt.err (!%p616_p12)
}
  0x3b   :  { %s620_s1 = scalar_lea.vmem %s748_s30, 1024  ;;  %p625_p0 = scmp.lt.s32.totalorder %s748_s30, %s748_s30 }
  0x3c   :  { %p621_p13 = scmp.ne.s32.totalorder %s748_s30, %s620_s1  ;;  %p626_p1 = scmp.lt.s32.totalorder %s620_s1, %s620_s1 }
  0x3e   :  { %p627_p2 = por %p626_p1, %p625_p0 }
  0x40   :  { %p628_p3 = pnand %p627_p2, %p621_p13 }
  0x42   :  { %631 = shalt.err (!%p628_p3)
}
  0x43   :  { %67 = dma.hbm_to_vmem [thread:$0]  %s835_s5, 1024, %s748_s30, [#allocation9], %s664_s13, %s664_s13, %s665_s14  }
  0x44   :  { %654 = dma.done.wait [#allocation3], 128  }
  0x45   :  { %655 = vsyncadd [#allocation3], 4294967168 }
  0x46   :  { %656 = dma.done.wait [#allocation6], 1280  }
  0x47   :  { %657 = vsyncadd [#allocation6], 4294966016 }
  0x48   :  { %658 = dma.done.wait [#allocation9], 1024  }
  0x49   :  { %659 = vsyncadd [#allocation9], 4294966272  ;;  %v668_v0 = vmov 0.0   ;;  %vm669_vm0 = vmmov 0   ;;  %v525_v1 = vld [vmem:[#allocation5] sm:$0xff]   ;;  %v526_v2 = vld [vmem:[#allocation5 + $0x8] sm:$0xff]  }
  0x4a   :  { %468 = vmatprep.subr.bf16.mxu0 %v668_v0  ;;  %472 = vmatprep.mubr.msk.bf16.mxu0 %vm669_vm0, %v668_v0  ;;  %v528_v3 = vld [vmem:[#allocation7] sm:$0xff]   ;;  %v527_v4 = vld [vmem:[#allocation2] sm:$0xff]   ;;  %vm113_vm1 = vcmask 261120   ;;  %v530_v6 = vld [vmem:[#allocation7 + $0x10] sm:$0xff]   ;;  %vm314_vm2 = vcmask 1041409   ;;  %s670_s28 = smov [#allocation10]  }
  0x4b   :  { %476 = vmatprep.subr.bf16.mxu1 %v668_v0  ;;  %492 = vmatprep.mubr.msk.bf16.mxu1 %vm669_vm0, %v668_v0  ;;  %v529_v5 = vld [vmem:[#allocation7 + $0x8] sm:$0xff]   ;;  %v531_v7 = vld [vmem:[#allocation7 + $0x18] sm:$0xff]   ;;  %v532_v8 = vld [vmem:[#allocation7 + $0x20] sm:$0xff]   ;;  %s413_s29 = sshll.u32 %s670_s28, 4  ;;  %s414_s29 = int_to_ptr.vmem [resolvable:$true] %s413_s29 }
  0x4c   :  { %469 = vmatpush3.bf16.msra.mxu0 %v525_v1  ;;  %477 = vmatpush3.bf16.msra.mxu1 %v528_v3  ;;  %v533_v9 = vld [vmem:[#allocation7 + $0x28] sm:$0xff]   ;;  %v534_v10 = vld [vmem:[#allocation7 + $0x30] sm:$0xff]   ;;  %v535_v11 = vld [vmem:[#allocation7 + $0x38] sm:$0xff]   ;;  %s632_s30 = scalar_lea.vmem %s414_s29, 32  ;;  %p637_p5 = scmp.lt.s32.totalorder %s414_s29, %s414_s29 }
  0x4d   :  { %470 = vmatprep.subr.bf16.mxu0 %v668_v0  ;;  %478 = vmatprep.subr.bf16.mxu1 %v668_v0  ;;  %v536_v12 = vld [vmem:[#allocation8] sm:$0xff]   ;;  %v537_v13 = vld [vmem:[#allocation8 + $0x8] sm:$0xff]   ;;  %v538_v24 = vld [vmem:[#allocation8 + $0x10] sm:$0xff]   ;;  %p633_p4 = scmp.ne.s32.totalorder %s414_s29, %s632_s30  ;;  %p638_p6 = scmp.lt.s32.totalorder %s632_s30, %s632_s30 }
  0x4e   :  { %v424_v14 = vld [vmem:[%s832_s2] ss:$0 sm:$0xff]  ;;  %v539_v25 = vld [vmem:[#allocation8 + $0x18] sm:$0xff]   ;;  %v540_v26 = vld [vmem:[#allocation8 + $0x20] sm:$0xff]  }
  0x4f   :  { %v541_v27 = vld [vmem:[#allocation8 + $0x28] sm:$0xff]   ;;  %v542_v28 = vld [vmem:[#allocation8 + $0x30] sm:$0xff]   ;;  %v543_v29 = vld [vmem:[#allocation8 + $0x38] sm:$0xff]   ;;  %p639_p7 = por %p638_p6, %p637_p5 }
  0x50   :  { %471 = vmatpush3.bf16.msra.mxu0 %v526_v2  ;;  %479 = vmatpush3.bf16.msra.mxu1 %v529_v5  ;;  %v429_v30 = vld [vmem:[%s834_s4] ss:$0 sm:$0xff] }
  0x51   :  { %496 = vmatprep.subr.bf16.mxu0 %v668_v0  ;;  %480 = vmatprep.subr.bf16.mxu1 %v668_v0  ;;  %v438_v55 = vld [vmem:[%s836_s6] ss:$0 sm:$0xff]  ;;  %p640_p8 = pnand %p639_p7, %p633_p4 }
  0x53   :  { %473 = vmatmul.mubr.msk.bf16.vlgmr.msra.gmra.mrb[0].mxu0 %vm113_vm1, %v527_v4 }
  0x54   :  { %512 = vmatprep.mubr.msk.bf16.mxu0 %vm669_vm0, %v668_v0  ;;  %481 = vmatpush3.bf16.msra.mxu1 %v530_v6 }
  0x55   :  { %482 = vmatprep.subr.bf16.mxu1 %v668_v0  ;;  %497 = vmatpush3.bf16.msra.mxu0 %v536_v12 }
  0x56   :  { %498 = vmatprep.subr.bf16.mxu0 %v668_v0 }
  0x58   :  { %483 = vmatpush3.bf16.msra.mxu1 %v531_v7 }
  0x59   :  { %484 = vmatprep.subr.bf16.mxu1 %v668_v0  ;;  %499 = vmatpush3.bf16.msra.mxu0 %v537_v13 }
  0x5a   :  { %500 = vmatprep.subr.bf16.mxu0 %v668_v0 }
  0x5c   :  { %485 = vmatpush3.bf16.msra.mxu1 %v532_v8 }
  0x5d   :  { %486 = vmatprep.subr.bf16.mxu1 %v668_v0  ;;  %501 = vmatpush3.bf16.msra.mxu0 %v538_v24 }
  0x5e   :  { %502 = vmatprep.subr.bf16.mxu0 %v668_v0 }
  0x60   :  { %487 = vmatpush3.bf16.msra.mxu1 %v533_v9 }
  0x61   :  { %488 = vmatprep.subr.bf16.mxu1 %v668_v0  ;;  %503 = vmatpush3.bf16.msra.mxu0 %v539_v25 }
  0x62   :  { %504 = vmatprep.subr.bf16.mxu0 %v668_v0 }
  0x64   :  { %489 = vmatpush3.bf16.msra.mxu1 %v534_v10 }
  0x65   :  { %490 = vmatprep.subr.bf16.mxu1 %v668_v0  ;;  %505 = vmatpush3.bf16.msra.mxu0 %v540_v26 }
  0x66   :  { %506 = vmatprep.subr.bf16.mxu0 %v668_v0 }
  0x68   :  { %491 = vmatpush3.bf16.msra.mxu1 %v535_v11 }
  0x69   :  { %507 = vmatpush3.bf16.msra.mxu0 %v541_v27 }
  0x6a   :  { %508 = vmatprep.subr.bf16.mxu0 %v668_v0 }
  0x6d   :  { %509 = vmatpush3.bf16.msra.mxu0 %v542_v28 }
  0x6e   :  { %510 = vmatprep.subr.bf16.mxu0 %v668_v0 }
  0x71   :  { %511 = vmatpush3.bf16.msra.mxu0 %v543_v29 }
 0x126   :  { %v151_v15 = vpop.f32.mrb[0].mxu0 }
 0x127   :  { %v152_v16 = vadd.f32 %v424_v14, %v151_v15  ;;  %v474_v17 = vpop.f32.mrb[1].mxu0 }
 0x128   :  { %v154_v18 = vpop.f32.mrb[2].mxu0 }
 0x129   :  { %v155_v19 = vadd.f32 %v424_v14, %v154_v18  ;;  %v475_v20 = vpop.f32.mrb[3].mxu0  ;;  %v158_v21 = vmax.f32 %v152_v16, 0.0 }
 0x12b   :  { %v159_v22 = vmax.f32 %v155_v19, 0.0 }
 0x12d   :  { %v160_v23 = vpack.c.bf16 %v159_v22, %v158_v21 }
 0x12f   :  { %493 = vmatmul.mubr.bf16.vlgmr.msra.gmra.mrb[0].mxu1 %v160_v23 }
 0x202   :  { %v266_v31 = vpop.f32.mrb[0].mxu1 }
 0x203   :  { %v267_v32 = vadd.f32 %v429_v30, %v266_v31  ;;  %v494_v33 = vpop.f32.mrb[1].mxu1 }
 0x204   :  { %v269_v34 = vpop.f32.mrb[2].mxu1 }
 0x205   :  { %v273_v35 = vrot.slane %v267_v32, 4  ;;  %v270_v36 = vadd.f32 %v429_v30, %v269_v34  ;;  %v495_v37 = vpop.f32.mrb[3].mxu1 }
 0x207   :  { %v274_v38 = vmax.f32 %v267_v32, %v273_v35  ;;  %v279_v39 = vrot.slane %v270_v36, 4 }
 0x209   :  { %v275_v40 = vrot.slane %v274_v38, 2  ;;  %v280_v41 = vmax.f32 %v270_v36, %v279_v39 }
 0x20b   :  { %v276_v42 = vmax.f32 %v274_v38, %v275_v40  ;;  %v281_v43 = vrot.slane %v280_v41, 2 }
 0x20d   :  { %v277_v44 = vrot.slane %v276_v42, 1  ;;  %v282_v45 = vmax.f32 %v280_v41, %v281_v43 }
 0x20f   :  { %v278_v46 = vmax.f32 %v276_v42, %v277_v44  ;;  %v283_v47 = vrot.slane %v282_v45, 1 }
 0x211   :  { %v285_v48 = vpack.c.bf16 %v278_v46, %v278_v46  ;;  %v284_v49 = vmax.f32 %v282_v45, %v283_v47 }
 0x213   :  { %v286_v50 = vpack.c.bf16 %v284_v49, %v284_v49  ;;  %v312_v51 = vunpack.c.l.b16 %v285_v48 }
 0x215   :  { %v313_v52 = vunpack.c.l.b16 %v286_v50 }
 0x217   :  { %v315_v53 = vsel %vm314_vm2, %v313_v52, %v312_v51 }
 0x218   :  { %v316_v54 = vpack.c.b16 %v315_v53, %v315_v53 }
 0x21a   :  { %513 = vmatmul.mubr.bf16.vlgmr.msra.gmra.mrb[4].mxu0 %v316_v54 }
 0x2ed   :  { %v400_v56 = vpop.f32.mrb[4].mxu0 }
 0x2ee   :  { %v401_v57 = vadd.f32 %v438_v55, %v400_v56  ;;  %v514_v58 = vpop.f32.mrb[5].mxu0 }
 0x2ef   :  { %v403_v59 = vpop.f32.mrb[6].mxu0 }
 0x2f0   :  { %406 = vst [vmem:[#allocation10] sm:$0x3] %v401_v57  ;;  %v515_v60 = vpop.f32.mrb[7].mxu0 }
 0x2f1   :  { %643 = shalt.err (!%p640_p8)
}
 0x2f2   :  { %s644_s6 = scalar_lea.hbm %s837_s7, 32 }
 0x2f3   :  { %p645_p9 = scmp.ne.s32.totalorder %s837_s7, %s644_s6  ;;  %p648_p10 = scmp.lt.u32.totalorder %s644_s6, %s837_s7 }
 0x2f5   :  { %p650_p11 = pnand %p648_p10, %p645_p9 }
 0x2f7   :  { %653 = shalt.err (!%p650_p11)
}
 0x2f8   :  { %416 = dma.vmem_to_hbm [thread:$0]  %s414_s29, 32, %s837_s7, [#allocation4]  }
 0x2f9   :  { %660 = dma.done.wait [#allocation4], 32  }
 0x2fa   :  { %661 = vsyncadd [#allocation4], 4294967264 }
 0x2fb   :  { %420 = vsyncpa [#allocation3], 1 }
 0x2fc   :  { %421 = vsyncpa [#allocation6], 1 }
 0x2fd   :  { %422 = vsyncpa [#allocation9], 1 }
 0x2fe   :  { %423 = vsyncpa [#allocation4], 1 }

</bundles_post_ra>
